<compile_context>
chip_gen: v5e
topology: v5e:2x2
jax: 0.10.0
libtpu: 0.0.40
codegen_flags: <defaults>
</compile_context>

<pallas_src>
import functools

import jax
import jax.numpy as jnp
import numpy as np
from jax.experimental import pallas as pl
from jax.experimental.pallas import tpu as pltpu


def _odeblock_kernel(x_ref, *rest, share_x0, dt):
    """Block shapes: x/x0/z (B_blk, N, T*F); adj (N, N); mix (T*F, T*F);
    acoef (N, 1) = dt * sigmoid(alpha) / 2."""
    if share_x0:
        adj_ref, mix_ref, acoef_ref, z_ref = rest
        x0_ref = None
    else:
        x0_ref, adj_ref, mix_ref, acoef_ref, z_ref = rest

    b_blk, n, tf = x_ref.shape
    x = x_ref[...]                      # (B_blk, N, T*F) f32
    adj = adj_ref[...]                  # (N, N)
    mix = mix_ref[...]                  # (T*F, T*F), already scaled by dt
    acoef = acoef_ref[...]              # (N, 1), broadcasts over lanes

    # Euler-step constants folded:  z = x + dt*(a/2*xa - 3x + xw + xw2 + x0)
    #   shared x0 (x0 == x):  (1 - 2*dt) * x + ...
    #   separate x0        :  (1 - 3*dt) * x + ... + dt * x0
    c_x = (1.0 - 2.0 * dt) if share_x0 else (1.0 - 3.0 * dt)

    # Fused feature + temporal mixing: one lane-dense MXU matmul over all
    # batches in the block ((B_blk*N, T*F) @ (T*F, T*F)).
    xmix = jnp.dot(x.reshape(b_blk * n, tf), mix,
                   preferred_element_type=jnp.float32).reshape(b_blk, n, tf)

    for b in range(b_blk):              # static unroll; B_blk is small
        xb = x[b]                       # (N, T*F)
        # node/graph mixing: one (N, N) @ (N, T*F) matmul -> MXU
        xa = jnp.dot(adj, xb, preferred_element_type=jnp.float32)
        zb = c_x * xb + acoef * xa + xmix[b]
        if not share_x0:
            x0b = x0_ref[b]
            zb = zb + (x0b if dt == 1.0 else dt * x0b)
        z_ref[b] = zb.astype(z_ref.dtype)


def odeblock_forward(x, x0, adj, w_raw, d_raw, w2_raw, d2_raw, alpha_raw,
                     t=(0.0, 1.0), share_x0=None):
    """x, x0: (B, N, T, F) in the PyTorch convention. Returns (B, N, T, F)."""
    B, N, T, F = x.shape
    TF = T * F
    dt = float(t[1] - t[0])
    if share_x0 is None:
        # STGODE's ODEG calls set_x0(x) immediately before forward(x); in that
        # path x0 is x and we drop the duplicate HBM input stream.
        share_x0 = x0 is x

    # --- batch-invariant parameter prep (tiny; matches ODEFunc.forward) ---
    d = jnp.clip(d_raw, 0.0, 1.0)
    w_eff = jnp.dot(w_raw * d, w_raw.T)                  # (F, F)
    d2 = jnp.clip(d2_raw, 0.0, 1.0)
    w2_eff = jnp.dot(w2_raw * d2, w2_raw.T)              # (T, T)
    # Fuse both right-hand mixings into one (T*F, T*F) operator on the
    # flattened trailing dims:  x_flat @ (kron(I_T, w) + kron(w2, I_F)).
    eye_f = jnp.eye(F, dtype=jnp.float32)
    eye_t = jnp.eye(T, dtype=jnp.float32)
    mix = (jnp.kron(eye_t, w_eff) + jnp.kron(w2_eff, eye_f)) * dt  # (T*F, T*F)
    mix = mix.astype(jnp.float32)
    acoef = ((dt * 0.5) * jax.nn.sigmoid(alpha_raw)).reshape(N, 1)
    acoef = acoef.astype(jnp.float32)

    # --- free layout glue: merge trailing (T, F) -> lane-dense T*F ---
    x_flat = x.reshape(B, N, TF)

    # --- batch blocking: ~4 MiB x-blocks (double-buffered x + x0 + z + params
    # stays well under v7x's 32 MiB scoped-VMEM default), keep >=2 grid steps
    # when possible so v7x's two TensorCores both get work. ---
    bytes_per_batch = N * TF * 4
    b_blk = max(1, min(B, (4 << 20) // max(bytes_per_batch, 1)))
    if B >= 2:
        b_blk = min(b_blk, (B + 1) // 2)
    while B % b_blk:
        b_blk -= 1
    grid = (B // b_blk,)

    blk = pl.BlockSpec((b_blk, N, TF), lambda i: (i, 0, 0))
    inputs = [x_flat]
    in_specs = [blk]
    if not share_x0:
        inputs.append(x0.reshape(B, N, TF))
        in_specs.append(blk)
    inputs += [adj.astype(jnp.float32), mix, acoef]
    in_specs += [
        pl.BlockSpec((N, N), lambda i: (0, 0)),          # adj
        pl.BlockSpec((TF, TF), lambda i: (0, 0)),        # fused mixing matrix
        pl.BlockSpec((N, 1), lambda i: (0, 0)),          # dt*sigmoid(alpha)/2
    ]

    kernel = functools.partial(_odeblock_kernel, share_x0=share_x0, dt=dt)

    z_flat = pl.pallas_call(
        kernel,
        out_shape=jax.ShapeDtypeStruct((B, N, TF), x.dtype),
        grid=grid,
        in_specs=in_specs,
        out_specs=blk,
        compiler_params=pltpu.CompilerParams(
            dimension_semantics=("parallel",)),
    )(*inputs)

    return z_flat.reshape(B, N, T, F)


def odeblock_reference(x, x0, adj, w_raw, d_raw, w2_raw, d2_raw, alpha_raw,
                       dt=1.0):
    """Pure-JAX reference mirroring the PyTorch module."""
    alpha = jax.nn.sigmoid(alpha_raw)[None, :, None, None]
    xa = jnp.einsum('ij,kjlm->kilm', adj, x)
    d = jnp.clip(d_raw, 0.0, 1.0)
    w = jnp.dot(w_raw * d, w_raw.T)
    xw = jnp.einsum('ijkl,lm->ijkm', x, w)
    d2 = jnp.clip(d2_raw, 0.0, 1.0)
    w2 = jnp.dot(w2_raw * d2, w2_raw.T)
    xw2 = jnp.einsum('ijkl,km->ijml', x, w2)
    f = alpha / 2 * xa - x + xw - x + xw2 - x + x0
    return x + dt * f


if __name__ == "__main__":
    B, N, T, F = 2, 16, 8, 32   # batch, nodes, temporal_dim, feature_dim
    key = jax.random.PRNGKey(0)
    ks = jax.random.split(key, 8)

    x = jax.random.normal(ks[0], (B, N, T, F), dtype=jnp.float32)

    # Normalized random adjacency (N, N)
    a = jax.random.uniform(ks[1], (N, N), dtype=jnp.float32)
    adj = a / jnp.sum(a, axis=1, keepdims=True)

    # ODEFunc parameters (shapes per __init__), perturbed so every term matters.
    alpha_raw = 0.8 * jnp.ones((N,), jnp.float32) \
        + 0.05 * jax.random.normal(ks[2], (N,), dtype=jnp.float32)
    w_raw = jnp.eye(F, dtype=jnp.float32) \
        + 0.1 * jax.random.normal(ks[3], (F, F), dtype=jnp.float32)
    d_raw = 0.7 * jnp.ones((F,), jnp.float32) \
        + 0.2 * jax.random.uniform(ks[4], (F,), dtype=jnp.float32)
    w2_raw = jnp.eye(T, dtype=jnp.float32) \
        + 0.1 * jax.random.normal(ks[5], (T, T), dtype=jnp.float32)
    d2_raw = 0.7 * jnp.ones((T,), jnp.float32) \
        + 0.2 * jax.random.uniform(ks[6], (T,), dtype=jnp.float32)

    # 1) STGODE ODEG path: set_x0(x) then forward(x)  (shared-x0 fast path).
    z = odeblock_forward(x, x, adj, w_raw, d_raw, w2_raw, d2_raw, alpha_raw)
    z = jax.block_until_ready(z)
    z_ref = odeblock_reference(x, x, adj, w_raw, d_raw, w2_raw, d2_raw,
                               alpha_raw, dt=1.0)
    np.testing.assert_allclose(np.asarray(z), np.asarray(z_ref),
                               rtol=1e-3, atol=1e-3)

    # 2) Generic path: x0 differs from x (separate x0 input stream).
    x0_sep = jax.random.normal(ks[7], (B, N, T, F), dtype=jnp.float32)
    z2 = odeblock_forward(x, x0_sep, adj, w_raw, d_raw, w2_raw, d2_raw,
                          alpha_raw)
    z2 = jax.block_until_ready(z2)
    z2_ref = odeblock_reference(x, x0_sep, adj, w_raw, d_raw, w2_raw, d2_raw,
                                alpha_raw, dt=1.0)
    np.testing.assert_allclose(np.asarray(z2), np.asarray(z2_ref),
                               rtol=1e-3, atol=1e-3)

    # 3) Non-unit time horizon (exercises the dt constant folding).
    z3 = odeblock_forward(x, x, adj, w_raw, d_raw, w2_raw, d2_raw, alpha_raw,
                          t=(0.0, 0.5))
    z3 = jax.block_until_ready(z3)
    z3_ref = odeblock_reference(x, x, adj, w_raw, d_raw, w2_raw, d2_raw,
                                alpha_raw, dt=0.5)
    np.testing.assert_allclose(np.asarray(z3), np.asarray(z3_ref),
                               rtol=1e-3, atol=1e-3)

    print("KERNEL_OK")
</pallas_src>

<mosaic_0001>
module attributes {stable_mosaic.version = 11 : i64} {
  func.func @_odeblock_kernel(%arg0: i32, %arg1: memref<1x16x256xf32, #tpu.memory_space<vmem>>, %arg2: memref<16x16xf32, #tpu.memory_space<vmem>>, %arg3: memref<256x256xf32, #tpu.memory_space<vmem>>, %arg4: memref<16x1xf32, #tpu.memory_space<vmem>>, %arg5: memref<1x16x256xf32, #tpu.memory_space<vmem>>) attributes {dimension_semantics = [#tpu.dimension_semantics<parallel>], iteration_bounds = array<i64: 2>, scalar_prefetch = 0 : i64, scratch_operands = 0 : i64, tpu.core_type = #tpu.core_type<tc>, window_params = [{transform_indices = @transform_0, window_bounds = array<i64: 1, 16, 256>}, {pipeline_mode = #tpu.pipeline_mode<synchronous>, transform_indices = @transform_1, window_bounds = array<i64: 16, 16>}, {pipeline_mode = #tpu.pipeline_mode<synchronous>, transform_indices = @transform_2, window_bounds = array<i64: 256, 256>}, {pipeline_mode = #tpu.pipeline_mode<synchronous>, transform_indices = @transform_3, window_bounds = array<i64: 16, 1>}, {transform_indices = @transform_4, window_bounds = array<i64: 1, 16, 256>}]} {
    %c0 = arith.constant 0 : index
    %c0_0 = arith.constant 0 : index
    %c0_1 = arith.constant 0 : index
    %0 = vector.load %arg1[%c0, %c0_0, %c0_1] : memref<1x16x256xf32, #tpu.memory_space<vmem>>, vector<1x16x256xf32>
    %c0_2 = arith.constant 0 : index
    %c0_3 = arith.constant 0 : index
    %1 = vector.load %arg2[%c0_2, %c0_3] : memref<16x16xf32, #tpu.memory_space<vmem>>, vector<16x16xf32>
    %c0_4 = arith.constant 0 : index
    %c0_5 = arith.constant 0 : index
    %2 = vector.load %arg3[%c0_4, %c0_5] : memref<256x256xf32, #tpu.memory_space<vmem>>, vector<256x256xf32>
    %c0_6 = arith.constant 0 : index
    %c0_7 = arith.constant 0 : index
    %3 = vector.load %arg4[%c0_6, %c0_7] : memref<16x1xf32, #tpu.memory_space<vmem>>, vector<16x1xf32>
    %4 = vector.shape_cast %0 : vector<1x16x256xf32> to vector<16x256xf32>
    %cst = arith.constant dense<0.000000e+00> : vector<16x256xf32>
    %5 = tpu.matmul %4, %2, %cst {dimension_numbers = #tpu.dot_dimension_numbers<[1], [0], [0], [1], [0, 0, 1, 1], [], []>} : vector<16x256xf32>, vector<256x256xf32>, vector<16x256xf32> -> vector<16x256xf32>
    %6 = vector.shape_cast %5 : vector<16x256xf32> to vector<1x16x256xf32>
    %7 = vector.shape_cast %0 : vector<1x16x256xf32> to vector<16x256xf32>
    %cst_8 = arith.constant dense<0.000000e+00> : vector<16x256xf32>
    %8 = tpu.matmul %1, %7, %cst_8 {dimension_numbers = #tpu.dot_dimension_numbers<[1], [0], [0], [1], [0, 0, 1, 1], [], []>} : vector<16x16xf32>, vector<16x256xf32>, vector<16x256xf32> -> vector<16x256xf32>
    %cst_9 = arith.constant -1.000000e+00 : f32
    %9 = vector.broadcast %cst_9 : f32 to vector<16x256xf32>
    %10 = arith.mulf %9, %7 : vector<16x256xf32>
    %11 = vector.broadcast %3 : vector<16x1xf32> to vector<16x256xf32>
    %12 = arith.mulf %11, %8 : vector<16x256xf32>
    %13 = arith.addf %10, %12 : vector<16x256xf32>
    %14 = vector.shape_cast %6 : vector<1x16x256xf32> to vector<16x256xf32>
    %15 = arith.addf %13, %14 : vector<16x256xf32>
    %c0_10 = arith.constant 0 : index
    %c0_11 = arith.constant 0 : index
    %c0_12 = arith.constant 0 : index
    %16 = vector.load %arg5[%c0_10, %c0_11, %c0_12] : memref<1x16x256xf32, #tpu.memory_space<vmem>>, vector<1x16x256xf32>
    %17 = vector.shape_cast %16 : vector<1x16x256xf32> to vector<16x256xf32>
    %18 = vector.shape_cast %15 : vector<16x256xf32> to vector<1x16x256xf32>
    tpu.vector_store %arg5[%c0_10, %c0_11, %c0_12], %18 {strides = array<i32>} : memref<1x16x256xf32, #tpu.memory_space<vmem>>, vector<1x16x256xf32>,
    return
  }
  func.func @transform_0(%arg0: i32) -> (i32, i32, i32) {
    %c0_i32 = arith.constant 0 : i32
    %c0_i32_0 = arith.constant 0 : i32
    %c0_i32_1 = arith.constant 0 : i32
    return %arg0, %c0_i32, %c0_i32_0 : i32, i32, i32
  }
  func.func @transform_1(%arg0: i32) -> (i32, i32) {
    %c0_i32 = arith.constant 0 : i32
    %c0_i32_0 = arith.constant 0 : i32
    %c0_i32_1 = arith.constant 0 : i32
    return %c0_i32, %c0_i32_0 : i32, i32
  }
  func.func @transform_2(%arg0: i32) -> (i32, i32) {
    %c0_i32 = arith.constant 0 : i32
    %c0_i32_0 = arith.constant 0 : i32
    %c0_i32_1 = arith.constant 0 : i32
    return %c0_i32, %c0_i32_0 : i32, i32
  }
  func.func @transform_3(%arg0: i32) -> (i32, i32) {
    %c0_i32 = arith.constant 0 : i32
    %c0_i32_0 = arith.constant 0 : i32
    %c0_i32_1 = arith.constant 0 : i32
    return %c0_i32, %c0_i32_0 : i32, i32
  }
  func.func @transform_4(%arg0: i32) -> (i32, i32, i32) {
    %c0_i32 = arith.constant 0 : i32
    %c0_i32_0 = arith.constant 0 : i32
    %c0_i32_1 = arith.constant 0 : i32
    return %arg0, %c0_i32, %c0_i32_0 : i32, i32, i32
  }
}

</mosaic_0001>

<bundles_post_ra>
// kernel: tpu_custom_call.1
= control target key start
LH: loop header
LB: loop body
LE: loop exit
PB: predicated region body
PF: predicated region fallthrough
CT: control target
= control target key end

     0   :  { %9 = vsyncpa [#allocation3], 0  ;;  %s999_s0 = inlined_call_operand.hbm [shape: f32[2,16,256], index: 0, kind: input, shape index: {}]   ;;  %s1000_s1 = inlined_call_operand.vmem [shape: f32[16,16], index: 1, kind: input, shape index: {}]   ;;  %s1001_s2 = inlined_call_operand.hbm [shape: f32[256,256], index: 2, kind: input, shape index: {}]   ;;  %s1002_s3 = inlined_call_operand.vmem [shape: f32[16,1], index: 3, kind: input, shape index: {}]   ;;  %s1003_s4 = inlined_call_operand.hbm [shape: f32[2,16,256], index: 4, kind: output, shape index: {}]  }
   0x1   :  { %11 = vsyncpa [#allocation3 + $0x1], 0 }
   0x2   :  { %12 = vsyncpa [#allocation6], 0 }
   0x3   :  { %13 = vsyncpa [#allocation4], 0 }
   0x4   :  { %15 = vsyncpa [#allocation4 + $0x1], 0  ;;  %s833_s15 = smov 0   ;;  %s835_s16 = smov 0  }
   0x5   :  { %s837_s17 = smov 0   ;;  %s839_s18 = smov 0  }
   0x6 LB: > { %s854_s19 = sadd.s32 4294967295, %s800_s18   ;;  %s581_s20 = sadd.s32 4294967294, %s800_s18   ;;  %s800_s18 = sphi %s839_s18, %s1013_s18   ;;  %s796_s17 = sphi %s837_s17, %s1012_s17   ;;  %s792_s16 = sphi %s835_s16, %s1011_s16   ;;  %s788_s15 = sphi %s833_s15, %s1010_s15  }
   0x7   : > { %p41_p0 = scmp.ne.s32.totalorder %s792_s16, %s788_s15  ;;  %p42_p1 = scmp.eq.s32.totalorder %s854_s19, 0 }
   0x8   : > { %p128_p2 = scmp.eq.s32.totalorder %s854_s19, 1  ;;  %p134_p3 = scmp.eq.s32.totalorder %s581_s20, 1 }
   0x9   : > { %p863_p4 = por %p42_p1, %p41_p0  ;;  %p582_p5 = scmp.ge.s32.totalorder %s800_s18, 1 }
   0xa   : > { %p868_p6 = por %p134_p3, %p41_p0  ;;  %p141_p7 = scmp.lt.s32.totalorder %s800_s18, 3 }
   0xb   : > { %s155_s25 = sshll.u32 %s1001_s2, 4  ;;  %s802_s27 = smov [#allocation5]   ;;  %s156_s25 = int_to_ptr.hbm [resolvable:$true] %s155_s25 }
   0xc   : > { %p876_p8 = pnand %p582_p5, %p141_p7  ;;  %s157_s28 = sshll.u32 %s802_s27, 4  ;;  %s158_s28 = int_to_ptr.vmem [resolvable:$true] %s157_s28 }
   0xd   : > { %s886_s29 = sadd.s32 1, %s800_s18   ;;  %s803_s30 = smov 256  }
   0xe   : > { %p615_p9 = pneg %p876_p8  ;;  %s804_s5 = smov 16  }
   0xf   : > { %s25_s6 = ssub.s32 %s800_s18, %s886_s29  ;;  %s28_s7 = sadd.s32 1, %s796_s17 }
  0x10   : > { %p616_p10 = pnand %p615_p9, %p42_p1  ;;  %p26_p12 = scmp.eq.s32.totalorder %s25_s6, 0 }
  0x11   : > { %p35_p13 = scmp.ne.s32.totalorder %s796_s17, %s792_s16  ;;  %p36_p0 = scmp.eq.s32.totalorder %s800_s18, 0 }
  0x12   : > { %618 = dma.hbm_to_vmem [thread:$0]  (!%p616_p10), %s156_s25, 8192, %s158_s28, [#allocation6], %s803_s30, %s803_s30, %s804_s5  }
  0x13   : > { %s898_s8 = scalar_select %p26_p12, %s796_s17, %s28_s7  }
  0x14   : > { %p902_p3 = por %p128_p2, %p35_p13  ;;  %p628_p5 = scmp.lt.s32.totalorder %s800_s18, 2 }
  0x15   : > { %s174_s10 = sand.u32 1, %s796_s17   ;;  %s601_s11 = sshll.u32 %s800_s18, 5 }
  0x16   : > { %p37_p7 = por %p36_p0, %p35_p13  ;;  %s585_s12 = sshll.u32 %s174_s10, 5 }
  0x17   : > { %s183_s20 = scalar_lea.hbm %s999_s0, %s601_s11  ;;  %s178_s24 = scalar_lea.vmem [#allocation2], %s585_s12 }
  0x18   : > { %s184_s23 = sshll.u32 %s183_s20, 4  ;;  %s186_s25 = sshll.u32 %s178_s24, 4  ;;  %s185_s23 = int_to_ptr.hbm [resolvable:$true] %s184_s23  ;;  %s187_s25 = int_to_ptr.vmem [resolvable:$true] %s186_s25 }
  0x19   : > { %p912_p9 = pnand %p628_p5, %p37_p7  ;;  %s175_s28 = scalar_lea.sflag [#allocation3], %s174_s10 }
  0x1a   : > { %s700_s6 = sshra.s32 %s185_s23, 4  ;;  %s707_s12 = scalar_lea.hbm %s999_s0, 64  ;;  %s701_s6 = int_to_ptr.hbm [resolvable:$true] %s700_s6 }
  0x1b   : > { %s702_s7 = scalar_lea.hbm %s701_s6, 32  ;;  %p704_p10 = pneg %p912_p9 }
  0x1c   : > { %p703_p2 = scmp.ne.s32.totalorder %s701_s6, %s702_s7  ;;  %p708_p0 = scmp.lt.s32.totalorder %s701_s6, %s999_s0 }
  0x1d   : > { %p709_p5 = scmp.lt.s32.totalorder %s707_s12, %s702_s7 }
  0x1e   : > { %p705_p12 = pnand %p704_p10, %p703_p2 }
  0x1f   : > { %p710_p7 = por %p709_p5, %p708_p0 }
  0x20   : > { %p706_p13 = pneg %p705_p12 }
  0x22   : > { %p711_p11 = pnand %p710_p7, %p706_p13 }
  0x24   : > { %714 = shalt.err (!%p711_p11)
}
  0x25   : > { %622 = dma.hbm_to_vmem [thread:$0]  (!%p912_p9), %s185_s23, 512, %s187_s25, %s175_s28, %s803_s30, %s803_s30, %s804_s5  }
  0x26   : > { %198 = sbr.rel (%p876_p8) target bundleno = 239 (0xef), region = 36  ;;  %s932_s10 = sand.u32 (!%p876_p8), 1, %s792_s16  }
  0x27   : > { %s589_s24 = sshll.u32 (!%p876_p8), %s932_s10, 5  ;;  %s201_s6 = scalar_lea.sflag (!%p876_p8), [#allocation3], %s932_s10 }
  0x28   : > { %s938_s7 = scalar_lea.vmem (!%p876_p8), [#allocation2], %s589_s24 }
  0x2b   : > { %775 = dma.done.wait (%p863_p4), %s201_s6, 512  }
  0x2c   : > { %777 = vsyncadd (%p863_p4), %s201_s6, 4294966784 }
  0x2d   : > { %779 = dma.done.wait (%p42_p1), [#allocation6], 8192  }
  0x2e   : > { %781 = vsyncadd (%p42_p1), [#allocation6], 4294959104  ;;  %v271_v0 = vld [vmem:[#allocation5 + $0xf0] sm:$0xff]  ;;  %v272_v2 = vld [vmem:[#allocation5 + $0xf8] sm:$0xff]  ;;  %vm399_vm0 = vcmask 130048   ;;  %s602_s11 = sshll.u32 %s854_s19, 5 }
  0x2f   : > { %v303_v1 = vld [vmem:[#allocation5 + $0x1f0] sm:$0xff]  ;;  %307 = vmatpush.msra.mxu0 %v271_v0  ;;  %v304_v3 = vld [vmem:[#allocation5 + $0x1f8] sm:$0xff]  ;;  %v269_v4 = vld [vmem:[#allocation5 + $0xe0] sm:$0xff]  ;;  %353 = vmatpush.msra.mxu2 %v272_v2  ;;  %s494_s14 = scalar_lea.hbm %s1003_s4, %s602_s11  ;;  %s234_s20 = scalar_lea.vmem [#allocation7], %s589_s24 }
  0x30   : > { %330 = vmatpush.msra.mxu1 %v303_v1  ;;  %v301_v5 = vld [vmem:[#allocation5 + $0x1e0] sm:$0xff]  ;;  %376 = vmatpush.msra.mxu3 %v304_v3  ;;  %v270_v6 = vld [vmem:[#allocation5 + $0xe8] sm:$0xff]  ;;  %v267_v8 = vld [vmem:[#allocation5 + $0xd0] sm:$0xff]  ;;  %s495_s6 = sshll.u32 %s234_s20, 4  ;;  %s497_s19 = sshll.u32 %s494_s14, 4  ;;  %s496_s6 = int_to_ptr.vmem [resolvable:$true] %s495_s6  ;;  %s498_s19 = int_to_ptr.hbm [resolvable:$true] %s497_s19 }
  0x31   : > { %v302_v7 = vld [vmem:[#allocation5 + $0x1e8] sm:$0xff]  ;;  %308 = vmatpush.msra.mxu0 %v269_v4  ;;  %v299_v9 = vld [vmem:[#allocation5 + $0x1d0] sm:$0xff]  ;;  %v268_v10 = vld [vmem:[#allocation5 + $0xd8] sm:$0xff]  ;;  %354 = vmatpush.msra.mxu2 %v270_v6  ;;  %s483_s24 = scalar_lea.sflag [#allocation4], %s932_s10  ;;  %s750_s5 = scalar_lea.hbm %s1003_s4, 64 }
  0x32   : > { %331 = vmatpush.msra.mxu1 %v301_v5  ;;  %v300_v11 = vld [vmem:[#allocation5 + $0x1d8] sm:$0xff]  ;;  %377 = vmatpush.msra.mxu3 %v302_v7  ;;  %v265_v12 = vld [vmem:[#allocation5 + $0xc0] sm:$0xff]  ;;  %v266_v14 = vld [vmem:[#allocation5 + $0xc8] sm:$0xff]  ;;  %v805_v5 = vmov 0  }
  0x33   : > { %v297_v13 = vld [vmem:[#allocation5 + $0x1c0] sm:$0xff]  ;;  %309 = vmatpush.msra.mxu0 %v267_v8  ;;  %v298_v15 = vld [vmem:[#allocation5 + $0x1c8] sm:$0xff]  ;;  %355 = vmatpush.msra.mxu2 %v268_v10  ;;  %v263_v16 = vld [vmem:[#allocation5 + $0xb0] sm:$0xff] }
  0x34   : > { %332 = vmatpush.msra.mxu1 %v299_v9  ;;  %378 = vmatpush.msra.mxu3 %v300_v11  ;;  %v295_v17 = vld [vmem:[#allocation5 + $0x1b0] sm:$0xff]  ;;  %v264_v18 = vld [vmem:[#allocation5 + $0xb8] sm:$0xff]  ;;  %v261_v20 = vld [vmem:[#allocation5 + $0xa0] sm:$0xff] }
  0x35   : > { %310 = vmatpush.msra.mxu0 %v265_v12  ;;  %v296_v19 = vld [vmem:[#allocation5 + $0x1b8] sm:$0xff]  ;;  %356 = vmatpush.msra.mxu2 %v266_v14  ;;  %v293_v21 = vld [vmem:[#allocation5 + $0x1a0] sm:$0xff]  ;;  %v262_v22 = vld [vmem:[#allocation5 + $0xa8] sm:$0xff] }
  0x36   : > { %333 = vmatpush.msra.mxu1 %v297_v13  ;;  %379 = vmatpush.msra.mxu3 %v298_v15  ;;  %v294_v23 = vld [vmem:[#allocation5 + $0x1a8] sm:$0xff]  ;;  %v259_v24 = vld [vmem:[#allocation5 + $0x90] sm:$0xff]  ;;  %v260_v26 = vld [vmem:[#allocation5 + $0x98] sm:$0xff] }
  0x37   : > { %311 = vmatpush.msra.mxu0 %v263_v16  ;;  %357 = vmatpush.msra.mxu2 %v264_v18  ;;  %v291_v25 = vld [vmem:[#allocation5 + $0x190] sm:$0xff]  ;;  %v292_v27 = vld [vmem:[#allocation5 + $0x198] sm:$0xff]  ;;  %v257_v28 = vld [vmem:[#allocation5 + $0x80] sm:$0xff] }
  0x38   : > { %334 = vmatpush.msra.mxu1 %v295_v17  ;;  %380 = vmatpush.msra.mxu3 %v296_v19  ;;  %v289_v29 = vld [vmem:[#allocation5 + $0x180] sm:$0xff]  ;;  %v258_v30 = vld [vmem:[#allocation5 + $0x88] sm:$0xff]  ;;  %v255_v32 = vld [vmem:[#allocation5 + $0x70] sm:$0xff] }
  0x39   : > { %312 = vmatpush.msra.mxu0 %v261_v20  ;;  %358 = vmatpush.msra.mxu2 %v262_v22  ;;  %v290_v31 = vld [vmem:[#allocation5 + $0x188] sm:$0xff]  ;;  %v287_v33 = vld [vmem:[#allocation5 + $0x170] sm:$0xff]  ;;  %v256_v34 = vld [vmem:[#allocation5 + $0x78] sm:$0xff] }
  0x3a   : > { %335 = vmatpush.msra.mxu1 %v293_v21  ;;  %381 = vmatpush.msra.mxu3 %v294_v23  ;;  %v288_v35 = vld [vmem:[#allocation5 + $0x178] sm:$0xff]  ;;  %v253_v36 = vld [vmem:[#allocation5 + $0x60] sm:$0xff]  ;;  %v254_v38 = vld [vmem:[#allocation5 + $0x68] sm:$0xff] }
  0x3b   : > { %313 = vmatpush.msra.mxu0 %v259_v24  ;;  %359 = vmatpush.msra.mxu2 %v260_v26  ;;  %v285_v37 = vld [vmem:[#allocation5 + $0x160] sm:$0xff]  ;;  %v286_v39 = vld [vmem:[#allocation5 + $0x168] sm:$0xff]  ;;  %v251_v40 = vld [vmem:[#allocation5 + $0x50] sm:$0xff] }
  0x3c   : > { %336 = vmatpush.msra.mxu1 %v291_v25  ;;  %382 = vmatpush.msra.mxu3 %v292_v27  ;;  %v283_v41 = vld [vmem:[#allocation5 + $0x150] sm:$0xff]  ;;  %v252_v42 = vld [vmem:[#allocation5 + $0x58] sm:$0xff]  ;;  %v249_v44 = vld [vmem:[#allocation5 + $0x40] sm:$0xff] }
  0x3d   : > { %314 = vmatpush.msra.mxu0 %v257_v28  ;;  %360 = vmatpush.msra.mxu2 %v258_v30  ;;  %v284_v43 = vld [vmem:[#allocation5 + $0x158] sm:$0xff]  ;;  %v281_v45 = vld [vmem:[#allocation5 + $0x140] sm:$0xff]  ;;  %v250_v46 = vld [vmem:[#allocation5 + $0x48] sm:$0xff] }
  0x3e   : > { %337 = vmatpush.msra.mxu1 %v289_v29  ;;  %383 = vmatpush.msra.mxu3 %v290_v31  ;;  %v282_v47 = vld [vmem:[#allocation5 + $0x148] sm:$0xff]  ;;  %v247_v48 = vld [vmem:[#allocation5 + $0x30] sm:$0xff]  ;;  %v248_v50 = vld [vmem:[#allocation5 + $0x38] sm:$0xff] }
  0x3f   : > { %315 = vmatpush.msra.mxu0 %v255_v32  ;;  %361 = vmatpush.msra.mxu2 %v256_v34  ;;  %v279_v49 = vld [vmem:[#allocation5 + $0x130] sm:$0xff]  ;;  %v280_v51 = vld [vmem:[#allocation5 + $0x138] sm:$0xff]  ;;  %v245_v52 = vld [vmem:[#allocation5 + $0x20] sm:$0xff] }
  0x40   : > { %338 = vmatpush.msra.mxu1 %v287_v33  ;;  %384 = vmatpush.msra.mxu3 %v288_v35  ;;  %v277_v53 = vld [vmem:[#allocation5 + $0x120] sm:$0xff]  ;;  %v246_v54 = vld [vmem:[#allocation5 + $0x28] sm:$0xff]  ;;  %v243_v56 = vld [vmem:[#allocation5 + $0x10] sm:$0xff] }
  0x41   : > { %316 = vmatpush.msra.mxu0 %v253_v36  ;;  %362 = vmatpush.msra.mxu2 %v254_v38  ;;  %v278_v55 = vld [vmem:[#allocation5 + $0x128] sm:$0xff]  ;;  %v275_v57 = vld [vmem:[#allocation5 + $0x110] sm:$0xff]  ;;  %v244_v58 = vld [vmem:[#allocation5 + $0x18] sm:$0xff] }
  0x42   : > { %339 = vmatpush.msra.mxu1 %v285_v37  ;;  %385 = vmatpush.msra.mxu3 %v286_v39  ;;  %v276_v59 = vld [vmem:[#allocation5 + $0x118] sm:$0xff]  ;;  %v241_v60 = vld [vmem:[#allocation5] sm:$0xff]  ;;  %v242_v62 = vld [vmem:[#allocation5 + $0x8] sm:$0xff] }
  0x43   : > { %317 = vmatpush.msra.mxu0 %v251_v40  ;;  %363 = vmatpush.msra.mxu2 %v252_v42  ;;  %v273_v61 = vld [vmem:[#allocation5 + $0x100] sm:$0xff]  ;;  %v274_v63 = vld [vmem:[#allocation5 + $0x108] sm:$0xff]  ;;  %v237_v2 = vld [vmem:[%s938_s7 + $0x10] sm:$0xff] }
  0x44   : > { %340 = vmatpush.msra.mxu1 %v283_v41  ;;  %386 = vmatpush.msra.mxu3 %v284_v43  ;;  %v235_v0 = vld [vmem:[%s938_s7] sm:$0xff]  ;;  %v236_v1 = vld [vmem:[%s938_s7 + $0x8] sm:$0xff]  ;;  %v238_v3 = vld [vmem:[%s938_s7 + $0x18] sm:$0xff]  ;;  %v454_v31 = vmul.f32 -1.0, %v237_v2  ;;  %s744_s7 = sshra.s32 %s498_s19, 4  ;;  %s745_s7 = int_to_ptr.hbm [resolvable:$true] %s744_s7 }
  0x45   : > { %318 = vmatpush.msra.mxu0 %v249_v44  ;;  %364 = vmatpush.msra.mxu2 %v250_v46  ;;  %v305_v4 = vld [vmem:[%s1002_s3] sm:$0xff]  ;;  %v306_v6 = vld [vmem:[%s1002_s3 + $0x8] sm:$0xff]  ;;  %v452_v18 = vmul.f32 -1.0, %v235_v0  ;;  %v453_v19 = vmul.f32 -1.0, %v236_v1  ;;  %v455_v32 = vmul.f32 -1.0, %v238_v3  ;;  %s746_s21 = scalar_lea.hbm %s745_s7, 32  ;;  %p751_p11 = scmp.lt.s32.totalorder %s745_s7, %s1003_s4 }
  0x46   : > { %341 = vmatpush.msra.mxu1 %v281_v45  ;;  %387 = vmatpush.msra.mxu3 %v282_v47  ;;  %v239_v7 = vld [vmem:[%s1000_s1] sm:$0xff]  ;;  %v240_v8 = vld [vmem:[%s1000_s1 + $0x8] sm:$0xff]  ;;  %p747_p1 = scmp.ne.s32.totalorder %s745_s7, %s746_s21  ;;  %p752_p9 = scmp.lt.s32.totalorder %s750_s5, %s746_s21 }
  0x47   : > { %319 = vmatpush.msra.mxu0 %v247_v48  ;;  %365 = vmatpush.msra.mxu2 %v248_v50 }
  0x48   : > { %342 = vmatpush.msra.mxu1 %v279_v49  ;;  %388 = vmatpush.msra.mxu3 %v280_v51  ;;  %p748_p4 = pnand %p747_p1, %p902_p3  ;;  %p753_p2 = por %p752_p9, %p751_p11 }
  0x49   : > { %320 = vmatpush.msra.mxu0 %v245_v52  ;;  %366 = vmatpush.msra.mxu2 %v246_v54 }
  0x4a   : > { %343 = vmatpush.msra.mxu1 %v277_v53  ;;  %389 = vmatpush.msra.mxu3 %v278_v55  ;;  %p749_p8 = pneg %p748_p4 }
  0x4b   : > { %321 = vmatpush.msra.mxu0 %v243_v56  ;;  %367 = vmatpush.msra.mxu2 %v244_v58 }
  0x4c   : > { %344 = vmatpush.msra.mxu1 %v275_v57  ;;  %390 = vmatpush.msra.mxu3 %v276_v59  ;;  %p754_p10 = pnand %p753_p2, %p749_p8 }
  0x4d   : > { %322 = vmatpush.msra.mxu0 %v241_v60  ;;  %368 = vmatpush.msra.mxu2 %v242_v62 }
  0x4e   : > { %345 = vmatpush.msra.mxu1 %v273_v61  ;;  %391 = vmatpush.msra.mxu3 %v274_v63 }
  0x4f   : > { %323 = vmatmul.f32.vlgmr.msra.gmra.mxu0 %v235_v0  ;;  %346 = vmatmul.f32.vlgmr.msra.gmra.mxu1 %v236_v1 }
  0x50   : > { %369 = vmatmul.f32.vlgmr.msra.gmra.mxu2 %v235_v0  ;;  %392 = vmatmul.f32.vlgmr.msra.gmra.mxu3 %v236_v1 }
  0x51   : > { %603 = vmatpush.msrb.mxu2 %v237_v2  ;;  %605 = vmatpush.msrb.mxu3 %v238_v3 }
  0x52   : > { %420 = vmatpush.msrb.mxu0 %v237_v2  ;;  %443 = vmatpush.msrb.mxu1 %v238_v3 }
  0x53   : > { %604 = vmatpush.msrb.mxu2 %v235_v0  ;;  %606 = vmatpush.msrb.mxu3 %v236_v1 }
  0x54   : > { %421 = vmatpush.msrb.mxu0 %v235_v0  ;;  %444 = vmatpush.msrb.mxu1 %v236_v1 }
  0x55   : > { %669 = vset.pattern.permute.xlu0 %v805_v5 }
  0x56   : > { %458 = vperm.xlu0 %669, %v305_v4  }
  0x57   : > { %326 = vmatmul.f32.gmra.mxu0 %v237_v2  ;;  %349 = vmatmul.f32.gmra.mxu1 %v238_v3 }
  0x58   : > { %372 = vmatmul.f32.gmra.mxu2 %v237_v2  ;;  %395 = vmatmul.f32.gmra.mxu3 %v238_v3 }
  0x5e   : > { %463 = vperm.xlu0 %669, %v306_v6  }
  0x5f   : > { %592 = vmatmul.msk.f32.vlgmr.msrb.gmra.mxu0 %vm399_vm0, %v239_v7  ;;  %594 = vmatmul.msk.f32.vlgmr.msrb.gmra.mxu1 %vm399_vm0, %v239_v7 }
  0x60   : > { %593 = vmatmul.msk.f32.vlgmr.msrb.gmra.mxu2 %vm399_vm0, %v240_v8  ;;  %595 = vmatmul.msk.f32.vlgmr.msrb.gmra.mxu3 %vm399_vm0, %v240_v8 }
  0xc8   : > { %v459_v15 = vpop.permute.xlu0 %458 }
  0xcc   : > { %v324_v9 = vpop.f32.mrf.mxu0  ;;  %v347_v10 = vpop.f32.mrf.mxu1 }
  0xcd   : > { %v348_v24 = vadd.f32 %v347_v10, %v324_v9 }
  0xd0   : > { %v464_v30 = vpop.permute.xlu0 %463 }
  0xd3   : > { %v370_v11 = vpop.f32.mrf.mxu2  ;;  %v393_v12 = vpop.f32.mrf.mxu3 }
  0xd4   : > { %v327_v13 = vpop.f32.mrf.mxu0  ;;  %v350_v14 = vpop.f32.mrf.mxu1  ;;  %v394_v25 = vadd.f32 %v393_v12, %v370_v11 }
  0xd5   : > { %v351_v37 = vadd.f32 %v350_v14, %v327_v13 }
  0xdb   : > { %v373_v16 = vpop.f32.mrf.mxu2  ;;  %v396_v17 = vpop.f32.mrf.mxu3 }
  0xdc   : > { %v423_v20 = vpop.f32.mrf.mxu0  ;;  %v446_v21 = vpop.f32.mrf.mxu1  ;;  %v397_v38 = vadd.f32 %v396_v17, %v373_v16 }
  0xdd   : > { %v466_v22 = vmul.f32 %v459_v15, %v423_v20  ;;  %v467_v23 = vmul.f32 %v459_v15, %v446_v21 }
  0xdf   : > { %v470_v26 = vadd.f32 %v466_v22, %v452_v18  ;;  %v471_v27 = vadd.f32 %v467_v23, %v453_v19 }
  0xe1   : > { %v474_v28 = vadd.f32 %v470_v26, %v348_v24  ;;  %v475_v29 = vadd.f32 %v471_v27, %v394_v25 }
  0xe3   : > { %478 = vst [vmem:[%s234_s20] sm:$0xff] %v474_v28  ;;  %v426_v33 = vpop.f32.mrf.mxu2  ;;  %v449_v34 = vpop.f32.mrf.mxu3 }
  0xe4   : > { %479 = vst [vmem:[%s234_s20 + $0x8] sm:$0xff] %v475_v29  ;;  %v468_v35 = vmul.f32 %v464_v30, %v426_v33  ;;  %v469_v36 = vmul.f32 %v464_v30, %v449_v34 }
  0xe6   : > { %v472_v39 = vadd.f32 %v468_v35, %v454_v31  ;;  %v473_v40 = vadd.f32 %v469_v36, %v455_v32 }
  0xe8   : > { %v476_v41 = vadd.f32 %v472_v39, %v351_v37  ;;  %v477_v42 = vadd.f32 %v473_v40, %v397_v38 }
  0xea   : > { %480 = vst [vmem:[%s234_s20 + $0x10] sm:$0xff] %v476_v41 }
  0xeb   : > { %481 = vst [vmem:[%s234_s20 + $0x18] sm:$0xff] %v477_v42 }
  0xec   : > { %757 = shalt.err (!%p754_p10)
}
  0xed   : > { %s806_s10 = smov 256   ;;  %s807_s27 = smov 16  }
  0xee   : > { %613 = dma.vmem_to_hbm [thread:$0]  (%p902_p3), %s496_s6, 512, %s498_s19, %s483_s24, %s806_s10, %s806_s10, %s807_s27  }
  0xef PF: > { %s512_s28 = sand.u32 1, %s788_s15   ;;  %p1009_p12 = scmp.ge.s32.totalorder %s800_s18, 2 }
  0xf0   : > { %s513_s11 = scalar_lea.sflag [#allocation4], %s512_s28 }
  0xf1   : > { %p624_p13 = pnand %p1009_p12, %p868_p6 }
  0xf3   : > { %p625_p0 = pneg %p624_p13 }
  0xf5   : > { %783 = dma.done.wait (%p625_p0), %s513_s11, 512  }
  0xf6   : > { %785 = vsyncadd (%p625_p0), %s513_s11, 4294966784  ;;  %p18_p5 = scmp.ge.s32.totalorder %s886_s29, 4   ;;  %s1010_s15 = smov %s792_s16 }
  0xf7   : > { %s1011_s16 = smov %s796_s17  ;;  %s1012_s17 = smov %s898_s8 }
  0xf8   : > { %s1013_s18 = smov %s886_s29  ;;  %20 = sbr.rel (!%p18_p5) target bundleno = 6 (0x6), region = 85 }
  0xfd   :  { %519 = vsyncpa [#allocation3], 1 }
  0xfe   :  { %521 = vsyncpa [#allocation3 + $0x1], 1 }
  0xff   :  { %522 = vsyncpa [#allocation6], 1 }
 0x100   :  { %523 = vsyncpa [#allocation4], 1 }
 0x101   :  { %525 = vsyncpa [#allocation4 + $0x1], 1 }

</bundles_post_ra>
